<compile_context>
chip_gen: v7x
topology: tpu7x:2x2x1
jax: 0.10.0
libtpu: 0.0.40
codegen_flags: <defaults>
</compile_context>

<pallas_src>
import functools

import jax
import jax.numpy as jnp
from jax.experimental import pallas as pl
from jax.experimental.pallas import tpu as pltpu


def _zero_conv3x3_kernel(x_ref, w_ref, b_ref, o_ref, *, tile_r, tap_offsets):
    """One (batch, row-tile) grid step of the fused conv + bias + channel scale.

    x_ref : (K, tile_win)      windowed (kw-interleaved or plain) input rows
    w_ref : (n_taps, Cout, K)  tap-major weights, pre-scaled by exp(3*scale)
    b_ref : (Cout, 1)          bias, pre-scaled by exp(3*scale)  (f32)
    o_ref : (Cout, TILE_R)     lane-dense transposed output tile
    """
    cout = o_ref.shape[0]
    # Initialize the accumulator with the broadcast bias (saves one epilogue pass).
    acc = jnp.broadcast_to(b_ref[...], (cout, tile_r)).astype(jnp.float32)
    for t, off in enumerate(tap_offsets):          # static, unrolled (3 or 9 taps)
        acc = acc + jnp.dot(w_ref[t], x_ref[:, off:off + tile_r],
                            preferred_element_type=jnp.float32)
    o_ref[...] = acc.astype(o_ref.dtype)


def _round_up(x, m):
    return -(-x // m) * m


def zero_conv2d(x_nchw, weight, bias, scale, *,
                compute_dtype=jnp.bfloat16, max_tile_r=2048):
    """ZeroConv2d forward.

    x_nchw : (B, Cin, H, W)
    weight : (Cout, Cin, 3, 3)  (PyTorch OIHW layout)
    bias   : (Cout,)
    scale  : broadcastable to (Cout,)  (PyTorch stores it as (1, Cout, 1, 1))
    returns: (B, Cout, H, W) float32
    """
    x_nchw = jnp.asarray(x_nchw)
    b, cin, h, w = x_nchw.shape
    cout = weight.shape[0]
    hp, wp = h + 2, w + 2
    rext = h * wp                          # extended output rows ("wrap trick")

    # ---- row-tile size: multiple of 256, capped so the f32 acc stays small ----
    acc_budget = 2 << 20
    tile_cap = max(256, min(int(max_tile_r), (acc_budget // (cout * 4)) // 256 * 256))
    n_tiles = max(1, -(-rext // tile_cap))
    tile_r = _round_up(-(-rext // n_tiles), 256)
    rext_pad = n_tiles * tile_r

    # ---- fold gamma = exp(3*scale) into weight & bias (relu-free epilogue) ----
    gamma = jnp.exp(3.0 * scale.reshape(-1).astype(jnp.float32))              # (Cout,)
    wg = weight.astype(jnp.float32) * gamma[:, None, None, None]              # (Cout,Cin,3,3)
    b_fold = (bias.astype(jnp.float32) * gamma).reshape(cout, 1)              # (Cout,1)

    interleave = cin <= 128                 # deepen K only where Cin is small
    if interleave:
        kdim, n_taps = 3 * cin, 3
        tap_offsets = tuple(kh * wp for kh in range(3))
        halo = 2 * wp
        # W_A[kh, o, kw*Cin + c] = W[o, c, kh, kw]
        w_taps = wg.transpose(2, 0, 3, 1).reshape(3, cout, 3 * cin)
    else:
        kdim, n_taps = cin, 9
        tap_offsets = tuple(kh * wp + kw for kh in range(3) for kw in range(3))
        halo = 2 * wp + 2
        # W_B[kh*3+kw, o, c] = W[o, c, kh, kw]
        w_taps = wg.transpose(2, 3, 0, 1).reshape(9, cout, cin)
    w_taps = w_taps.astype(compute_dtype)
    tile_win = tile_r + halo
    s_len = rext_pad + halo                 # flattened slab length fed to windows

    # ---- pad spatially with value 1 and flatten rows (channels-first: NCHW in,
    #      NCHW out — no NHWC round trip) ----
    xp = jnp.pad(x_nchw.astype(compute_dtype),
                 ((0, 0), (0, 0), (1, 1), (1, 1)), constant_values=1.0)
    xf = xp.reshape(b, cin, hp * wp)
    if interleave:
        # slab[b, kw*Cin + c, s] = xf[b, c, s + kw]   (3x blowup of a small tensor)
        xf = jnp.pad(xf, ((0, 0), (0, 0), (0, s_len + 2 - hp * wp)),
                     constant_values=1.0)   # safety rows only feed discarded cols
        slab = jnp.concatenate([xf[:, :, kw:kw + s_len] for kw in range(3)], axis=1)
    else:
        slab = jnp.pad(xf, ((0, 0), (0, 0), (0, s_len - hp * wp)),
                       constant_values=1.0)
    # Overlapping per-row-tile windows: (B, n_tiles, K, tile_win).  Keeps per-step
    # VMEM image-size independent and makes every in-kernel tap slice static.
    x_win = jnp.stack([slab[:, :, j * tile_r: j * tile_r + tile_win]
                       for j in range(n_tiles)], axis=1)

    # ---- VMEM budget (generation aware) ----
    dsize = jnp.dtype(compute_dtype).itemsize
    need = (2 * kdim * tile_win * dsize          # input windows (double-buffered)
            + 2 * n_taps * cout * kdim * dsize   # weights
            + 2 * cout * 4                       # bias
            + 2 * cout * tile_r * 4              # output tiles (double-buffered)
            + n_taps * kdim * tile_r * dsize     # materialized tap slices (upper bound)
            + cout * tile_r * 4                  # accumulator
            + (2 << 20))                         # compiler scratch headroom
    try:
        cap = int(pltpu.get_tpu_info().vmem_capacity_bytes)
    except Exception:
        cap = 64 * 2**20                         # conservative (v7x per-TC) fallback
    vmem_limit = int(min(int(0.75 * cap), max(32 * 2**20, 2 * need)))

    out_ext = pl.pallas_call(
        functools.partial(_zero_conv3x3_kernel,
                          tile_r=tile_r, tap_offsets=tap_offsets),
        out_shape=jax.ShapeDtypeStruct((b, cout, rext_pad), jnp.float32),
        grid=(b, n_tiles),
        in_specs=[
            # per-(batch, row-tile) input window; disjoint blocks -> safe to mark
            # both grid axes parallel (no duplicated per-batch slab DMA on v7x)
            pl.BlockSpec((None, None, kdim, tile_win), lambda bi, j: (bi, j, 0, 0)),
            # weights / bias: constant index_map -> DMA'd once, VMEM-resident
            pl.BlockSpec((n_taps, cout, kdim), lambda bi, j: (0, 0, 0)),
            pl.BlockSpec((cout, 1), lambda bi, j: (0, 0)),
        ],
        out_specs=pl.BlockSpec((None, cout, tile_r), lambda bi, j: (bi, 0, j)),
        compiler_params=pltpu.CompilerParams(
            dimension_semantics=("parallel", "parallel"),
            vmem_limit_bytes=vmem_limit),
    )(x_win, w_taps, b_fold)

    # Drop the 2 junk columns per image row introduced by the extended width.
    # Output is already NCHW (lane-dense kernel stores, no transpose needed).
    out = out_ext[:, :, :rext].reshape(b, cout, h, wp)[:, :, :, :w]
    return out


# ----------------------------- plain-JAX reference -----------------------------
def zero_conv2d_ref(x_nchw, weight, bias, scale):
    xp = jnp.pad(x_nchw.astype(jnp.float32),
                 ((0, 0), (0, 0), (1, 1), (1, 1)), constant_values=1.0)
    out = jax.lax.conv_general_dilated(
        xp, weight.astype(jnp.float32), window_strides=(1, 1), padding="VALID",
        dimension_numbers=("NCHW", "OIHW", "NCHW"))
    out = out + bias.reshape(1, -1, 1, 1)
    return out * jnp.exp(3.0 * scale.reshape(1, -1, 1, 1))


if __name__ == "__main__":
    key = jax.random.PRNGKey(0)
    k_x, k_w, k_b, k_s = jax.random.split(key, 4)

    B, CIN, COUT, H, W = 2, 4, 8, 16, 16
    x = jax.random.normal(k_x, (B, CIN, H, W), jnp.float32)

    fwd = jax.jit(zero_conv2d, static_argnames=("compute_dtype", "max_tile_r"))

    # (a) the module's actual initialization: zero weight/bias/scale -> exact zeros
    w0 = jnp.zeros((COUT, CIN, 3, 3), jnp.float32)
    b0 = jnp.zeros((COUT,), jnp.float32)
    s0 = jnp.zeros((1, COUT, 1, 1), jnp.float32)
    out0 = fwd(x, w0, b0, s0)
    jax.block_until_ready(out0)
    assert out0.shape == (B, COUT, H, W)
    assert float(jnp.max(jnp.abs(out0))) == 0.0

    # (b) generic params, f32 operand path vs lax.conv reference (tight tolerance)
    wr = 0.05 * jax.random.normal(k_w, (COUT, CIN, 3, 3), jnp.float32)
    br = 0.10 * jax.random.normal(k_b, (COUT,), jnp.float32)
    sr = 0.10 * jax.random.normal(k_s, (1, COUT, 1, 1), jnp.float32)
    ref = zero_conv2d_ref(x, wr, br, sr)

    out_f32 = fwd(x, wr, br, sr, compute_dtype=jnp.float32)
    jax.block_until_ready(out_f32)
    err = float(jnp.max(jnp.abs(out_f32 - ref)))
    assert jnp.allclose(out_f32, ref, atol=1e-4, rtol=1e-4), err

    # (c) default bf16-operand path (f32 MXU accumulation) -> bf16-level tolerance
    out_bf16 = fwd(x, wr, br, sr)
    jax.block_until_ready(out_bf16)
    err = float(jnp.max(jnp.abs(out_bf16 - ref)))
    assert jnp.allclose(out_bf16, ref, atol=2e-2, rtol=2e-2), err

    # (d) Cin > 128 exercises the non-interleaved 9-tap (K = Cin) fallback path
    CIN2, COUT2, H2, W2 = 160, 8, 8, 8
    x2 = jax.random.normal(k_x, (1, CIN2, H2, W2), jnp.float32)
    w2 = 0.02 * jax.random.normal(k_w, (COUT2, CIN2, 3, 3), jnp.float32)
    b2 = 0.10 * jax.random.normal(k_b, (COUT2,), jnp.float32)
    s2 = 0.10 * jax.random.normal(k_s, (1, COUT2, 1, 1), jnp.float32)
    out2 = fwd(x2, w2, b2, s2, compute_dtype=jnp.float32)
    jax.block_until_ready(out2)
    ref2 = zero_conv2d_ref(x2, w2, b2, s2)
    err = float(jnp.max(jnp.abs(out2 - ref2)))
    assert jnp.allclose(out2, ref2, atol=1e-3, rtol=1e-3), err

    print("KERNEL_OK")
</pallas_src>

<mosaic_0001>
module attributes {stable_mosaic.version = 11 : i64} {
  func.func @_zero_conv3x3_kernel(%arg0: i32, %arg1: i32, %arg2: memref<1x1x12x548xbf16, #tpu.memory_space<vmem>>, %arg3: memref<3x8x12xbf16, #tpu.memory_space<vmem>>, %arg4: memref<8x1xf32, #tpu.memory_space<vmem>>, %arg5: memref<1x8x512xf32, #tpu.memory_space<vmem>>) attributes {dimension_semantics = [#tpu.dimension_semantics<parallel>, #tpu.dimension_semantics<parallel>], iteration_bounds = array<i64: 2, 1>, scalar_prefetch = 0 : i64, scratch_operands = 0 : i64, tpu.core_type = #tpu.core_type<tc>, window_params = [{transform_indices = @transform_0, window_bounds = array<i64: 1, 1, 12, 548>}, {pipeline_mode = #tpu.pipeline_mode<synchronous>, transform_indices = @transform_1, window_bounds = array<i64: 3, 8, 12>}, {pipeline_mode = #tpu.pipeline_mode<synchronous>, transform_indices = @transform_2, window_bounds = array<i64: 8, 1>}, {transform_indices = @transform_3, window_bounds = array<i64: 1, 8, 512>}]} {
    %c0 = arith.constant 0 : index
    %c0_0 = arith.constant 0 : index
    %0 = vector.load %arg4[%c0, %c0_0] : memref<8x1xf32, #tpu.memory_space<vmem>>, vector<8x1xf32>
    %1 = vector.shape_cast %0 : vector<8x1xf32> to vector<8x1xf32>
    %2 = vector.broadcast %1 : vector<8x1xf32> to vector<8x512xf32>
    %c0_1 = arith.constant 0 : index
    %c0_2 = arith.constant 0 : index
    %c0_3 = arith.constant 0 : index
    %3 = vector.load %arg3[%c0_1, %c0_2, %c0_3] : memref<3x8x12xbf16, #tpu.memory_space<vmem>>, vector<1x8x12xbf16>
    %4 = vector.shape_cast %3 : vector<1x8x12xbf16> to vector<8x12xbf16>
    %c0_4 = arith.constant 0 : index
    %c0_5 = arith.constant 0 : index
    %c0_6 = arith.constant 0 : index
    %c0_7 = arith.constant 0 : index
    %5 = vector.load %arg2[%c0_4, %c0_5, %c0_6, %c0_7] : memref<1x1x12x548xbf16, #tpu.memory_space<vmem>>, vector<1x1x12x512xbf16>
    %6 = vector.shape_cast %5 : vector<1x1x12x512xbf16> to vector<12x512xbf16>
    %cst = arith.constant dense<0.000000e+00> : vector<8x512xf32>
    %7 = tpu.matmul %4, %6, %cst {dimension_numbers = #tpu.dot_dimension_numbers<[1], [0], [0], [1], [0, 0, 1, 1], [], []>} : vector<8x12xbf16>, vector<12x512xbf16>, vector<8x512xf32> -> vector<8x512xf32>
    %8 = arith.addf %2, %7 : vector<8x512xf32>
    %c1 = arith.constant 1 : index
    %c0_8 = arith.constant 0 : index
    %c0_9 = arith.constant 0 : index
    %9 = vector.load %arg3[%c1, %c0_8, %c0_9] : memref<3x8x12xbf16, #tpu.memory_space<vmem>>, vector<1x8x12xbf16>
    %10 = vector.shape_cast %9 : vector<1x8x12xbf16> to vector<8x12xbf16>
    %c0_10 = arith.constant 0 : index
    %c0_11 = arith.constant 0 : index
    %c0_12 = arith.constant 0 : index
    %c18 = arith.constant 18 : index
    %11 = vector.load %arg2[%c0_10, %c0_11, %c0_12, %c18] : memref<1x1x12x548xbf16, #tpu.memory_space<vmem>>, vector<1x1x12x512xbf16>
    %12 = vector.shape_cast %11 : vector<1x1x12x512xbf16> to vector<12x512xbf16>
    %cst_13 = arith.constant dense<0.000000e+00> : vector<8x512xf32>
    %13 = tpu.matmul %10, %12, %cst_13 {dimension_numbers = #tpu.dot_dimension_numbers<[1], [0], [0], [1], [0, 0, 1, 1], [], []>} : vector<8x12xbf16>, vector<12x512xbf16>, vector<8x512xf32> -> vector<8x512xf32>
    %14 = arith.addf %8, %13 : vector<8x512xf32>
    %c2 = arith.constant 2 : index
    %c0_14 = arith.constant 0 : index
    %c0_15 = arith.constant 0 : index
    %15 = vector.load %arg3[%c2, %c0_14, %c0_15] : memref<3x8x12xbf16, #tpu.memory_space<vmem>>, vector<1x8x12xbf16>
    %16 = vector.shape_cast %15 : vector<1x8x12xbf16> to vector<8x12xbf16>
    %c0_16 = arith.constant 0 : index
    %c0_17 = arith.constant 0 : index
    %c0_18 = arith.constant 0 : index
    %c36 = arith.constant 36 : index
    %17 = vector.load %arg2[%c0_16, %c0_17, %c0_18, %c36] : memref<1x1x12x548xbf16, #tpu.memory_space<vmem>>, vector<1x1x12x512xbf16>
    %18 = vector.shape_cast %17 : vector<1x1x12x512xbf16> to vector<12x512xbf16>
    %cst_19 = arith.constant dense<0.000000e+00> : vector<8x512xf32>
    %19 = tpu.matmul %16, %18, %cst_19 {dimension_numbers = #tpu.dot_dimension_numbers<[1], [0], [0], [1], [0, 0, 1, 1], [], []>} : vector<8x12xbf16>, vector<12x512xbf16>, vector<8x512xf32> -> vector<8x512xf32>
    %20 = arith.addf %14, %19 : vector<8x512xf32>
    %c0_20 = arith.constant 0 : index
    %c0_21 = arith.constant 0 : index
    %c0_22 = arith.constant 0 : index
    %21 = vector.load %arg5[%c0_20, %c0_21, %c0_22] : memref<1x8x512xf32, #tpu.memory_space<vmem>>, vector<1x8x512xf32>
    %22 = vector.shape_cast %21 : vector<1x8x512xf32> to vector<8x512xf32>
    %23 = vector.shape_cast %20 : vector<8x512xf32> to vector<1x8x512xf32>
    tpu.vector_store %arg5[%c0_20, %c0_21, %c0_22], %23 {strides = array<i32>} : memref<1x8x512xf32, #tpu.memory_space<vmem>>, vector<1x8x512xf32>,
    return
  }
  func.func @transform_0(%arg0: i32, %arg1: i32) -> (i32, i32, i32, i32) {
    %c0_i32 = arith.constant 0 : i32
    %c0_i32_0 = arith.constant 0 : i32
    %c0_i32_1 = arith.constant 0 : i32
    return %arg0, %arg1, %c0_i32, %c0_i32_0 : i32, i32, i32, i32
  }
  func.func @transform_1(%arg0: i32, %arg1: i32) -> (i32, i32, i32) {
    %c0_i32 = arith.constant 0 : i32
    %c0_i32_0 = arith.constant 0 : i32
    %c0_i32_1 = arith.constant 0 : i32
    %c0_i32_2 = arith.constant 0 : i32
    return %c0_i32, %c0_i32_0, %c0_i32_1 : i32, i32, i32
  }
  func.func @transform_2(%arg0: i32, %arg1: i32) -> (i32, i32) {
    %c0_i32 = arith.constant 0 : i32
    %c0_i32_0 = arith.constant 0 : i32
    %c0_i32_1 = arith.constant 0 : i32
    return %c0_i32, %c0_i32_0 : i32, i32
  }
  func.func @transform_3(%arg0: i32, %arg1: i32) -> (i32, i32, i32) {
    %c0_i32 = arith.constant 0 : i32
    %c0_i32_0 = arith.constant 0 : i32
    return %arg0, %c0_i32, %arg1 : i32, i32, i32
  }
}

</mosaic_0001>

<bundles_post_ra>
// kernel: zero_conv2d.1
= control target key start
LH: loop header
LB: loop body
LE: loop exit
PB: predicated region body
PF: predicated region fallthrough
CT: control target
= control target key end

     0   :  { %s835_s12 = smov 0   ;;  %s837_s13 = smov 0   ;;  %s909_s0 = inlined_call_operand.vmem [shape: bf16[2,1,12,548], index: 0, kind: input, shape index: {}]   ;;  %s910_s1 = inlined_call_operand.vmem [shape: bf16[3,8,12], index: 1, kind: input, shape index: {}]   ;;  %s911_s2 = inlined_call_operand.vmem [shape: f32[8,1], index: 2, kind: input, shape index: {}]   ;;  %s912_s3 = inlined_call_operand.vmem [shape: f32[2,8,512], index: 3, kind: output, shape index: {}]  }
   0x1   :  { %s839_s14 = smov 0  }
   0x2 LB: > { %s25_s15 = sadd.s32 1, %s806_s13  ;;  %p700_p0 = scmp.ge.s32.totalorder %s810_s14, 1  ;;  %s810_s14 = sphi %s839_s14, %s13_s14   ;;  %s806_s13 = sphi %s837_s13, %s914_s13   ;;  %s802_s12 = sphi %s835_s12, %s913_s12  }
   0x3   : > { %p27_p1 = scmp.ge.s32.totalorder %s25_s15, 2  ;;  %p157_p2 = scmp.lt.s32.totalorder %s810_s14, 3 }
   0x5   : > { %s916_s15 = smov (%p27_p1, %s25_s15), 0  ;;  %p158_p3 = pnand %p700_p0, %p157_p2 }
   0x6   : > { %p189_p4 = scmp.lt.s32.totalorder (!%p158_p3), %s802_s12, 1  ;;  %v812_v0 = vmov (!%p158_p3), 0   ;;  %vm240_vm0 = vcmask (!%p158_p3), 1045504   ;;  %s813_s20 = smov (!%p158_p3), 110   ;;  %v215_v16 = vld [vmem:[%s910_s1] sm:$0xf] (!%p158_p3) }
   0x7   : > { %161 = sbr.rel (%p158_p3) target bundleno = 378 (0x17a), region = 32  ;;  %285 = vmatprep.mubr.bf16.mxu0 (!%p158_p3), %v812_v0  ;;  %326 = vmatprep.mubr.bf16.mxu1 (!%p158_p3), %v812_v0  ;;  %vm236_vm1 = vcmask (!%p158_p3), 97280   ;;  %s814_s23 = smov (!%p158_p3), 92   ;;  %v209_v19 = vld [vmem:[%s911_s2] sm:$0xff] (!%p158_p3)  ;;  %vm378_vm2 = vcmask (!%p158_p3), 900096   ;;  %vm496_vm3 = vcmask (!%p158_p3), 752640  }
   0x8   : > { %778 = vset.pattern.permute.xlu0 (!%p158_p3), %v812_v0  ;;  %v712_v29 = vld [vmem:[%s910_s1 + $0x4] sm:$0xf] (!%p158_p3)  ;;  %v722_v43 = vld [vmem:[%s910_s1 + $0x8] sm:$0xf] (!%p158_p3) }
   0xe   : > { %s918_s12 = smov (!%p189_p4, %s802_s12), 1 }
   0xf   : > { %s750_s16 = smul.u32 40, %s918_s12  ;;  %s729_s30 = sshll.u32 %s918_s12, 5 }
  0x10   : > { %s206_s6 = scalar_lea.vmem %s912_s3, %s729_s30 }
  0x11   : > { %s197_s19 = scalar_lea.vmem %s909_s0, %s750_s16 }
  0x12   : > { %v342_v1 = vld [vmem:[%s197_s19 + $0x8] sm:$0xff]  ;;  %v345_v2 = vld [vmem:[%s197_s19 + $0x1c] sm:$0x33]  ;;  %v344_v5 = vld [vmem:[%s197_s19 + $0x14] sm:$0x33] }
  0x13   : > { %v341_v3 = vld [vmem:[%s197_s19] sm:$0xff]  ;;  %v715_v4 = vcombine.low %v342_v1, %v345_v2  ;;  %v218_v7 = vld [vmem:[%s197_s19 + $0x14] sm:$0x33]  ;;  %v716_v8 = vcombine.high %v342_v1, %v345_v2 }
  0x14   : > { %v713_v6 = vcombine.low %v341_v3, %v344_v5  ;;  %v705_v9 = vcombine.high %v341_v3, %v218_v7  ;;  %v704_v10 = vcombine.low %v341_v3, %v218_v7  ;;  %v219_v11 = vld [vmem:[%s197_s19 + $0x1c] sm:$0x33]  ;;  %v714_v12 = vcombine.high %v341_v3, %v344_v5  ;;  %v783_v18 = vld [vmem:[%s197_s19 + $0x10] ss:$20 sps:$4 sm:$0x3f]  }
  0x15   : > { %372 = vrot.lane.b32.xlu1 %v715_v4, %s813_s20  ;;  %v707_v13 = vcombine.high %v342_v1, %v219_v11  ;;  %v706_v14 = vcombine.low %v342_v1, %v219_v11 }
  0x16   : > { %368 = vrot.lane.b32.xlu0 %v713_v6, %s813_s20  ;;  %708 = vmatprep.subr.msk.bf16.mxu0 %vm240_vm0, %v705_v9  ;;  %v242_v15 = vsel %vm240_vm0, %v704_v10, 0 }
  0x17   : > { %254 = vmatpush1.bf16.msra.mxu0 %v242_v15  ;;  %710 = vmatprep.subr.msk.bf16.mxu1 %vm240_vm0, %v707_v13  ;;  %v248_v17 = vsel %vm240_vm0, %v706_v14, 0 }
  0x18   : > { %295 = vmatpush1.bf16.msra.mxu1 %v248_v17 }
  0x19   : > { %374 = vrot.lane.b32.xlu1 %v716_v8, %s813_s20 }
  0x1a   : > { %370 = vrot.lane.b32.xlu0 %v714_v12, %s813_s20  ;;  %709 = vmatmul.mubr.msk.bf16.vlgmr.msra.gmra.mrb[0].mxu0 %vm236_vm1, %v215_v16 }
  0x1b   : > { %711 = vmatmul.mubr.msk.bf16.vlgmr.msra.gmra.mrb[0].mxu1 %vm236_vm1, %v215_v16  ;;  %430 = vmatprep.mubr.bf16.mxu0 %v812_v0 }
  0x1c   : > { %471 = vmatprep.mubr.bf16.mxu1 %v812_v0 }
  0x1d   : > { %486 = vrot.lane.b32.xlu1 %v713_v6, %s814_s23 }
  0x1e   : > { %376 = vrot.lane.b32.xlu0 %v783_v18, %s813_s20 }
  0x21   : > { %490 = vrot.lane.b32.xlu1 %v715_v4, %s814_s23 }
  0x22   : > { %488 = vrot.lane.b32.xlu0 %v714_v12, %s814_s23 }
  0x25   : > { %494 = vrot.lane.b32.xlu1 %v783_v18, %s814_s23 }
  0x26   : > { %492 = vrot.lane.b32.xlu0 %v716_v8, %s814_s23 }
  0x2a   : > { %212 = vperm.xlu0 %778, %v209_v19  }
  0x87   : > { %v373_v20 = vpop.permute.xlu1 %372 }
  0x88   : > { %v369_v21 = vpop.permute.xlu0 %368 }
  0x8b   : > { %v375_v22 = vpop.permute.xlu1 %374 }
  0x8c   : > { %v371_v23 = vpop.permute.xlu0 %370  ;;  %v381_v27 = vsel %vm378_vm2, %v373_v20, %v375_v22 }
  0x8d   : > { %v379_v24 = vsel %vm378_vm2, %v369_v21, %v371_v23  ;;  %v380_v25 = vsel %vm378_vm2, %v371_v23, %v373_v20  ;;  %v393_v32 = vsel %vm240_vm0, %v381_v27, 0 }
  0x8e   : > { %v387_v26 = vsel %vm240_vm0, %v379_v24, 0  ;;  %718 = vmatprep.subr.msk.bf16.mxu0 %vm240_vm0, %v380_v25 }
  0x8f   : > { %399 = vmatpush1.bf16.msra.mxu0 %v387_v26  ;;  %v487_v28 = vpop.permute.xlu1 %486 }
  0x90   : > { %v377_v30 = vpop.permute.xlu0 %376 }
  0x91   : > { %v382_v31 = vsel %vm378_vm2, %v375_v22, %v377_v30 }
  0x92   : > { %719 = vmatmul.mubr.msk.bf16.vlgmr.msra.gmra.mrb[0].mxu0 %vm236_vm1, %v712_v29  ;;  %720 = vmatprep.subr.msk.bf16.mxu1 %vm240_vm0, %v382_v31 }
  0x93   : > { %440 = vmatpush1.bf16.msra.mxu1 %v393_v32  ;;  %v491_v33 = vpop.permute.xlu1 %490  ;;  %548 = vmatprep.mubr.bf16.mxu0 %v812_v0 }
  0x94   : > { %v489_v34 = vpop.permute.xlu0 %488 }
  0x95   : > { %v497_v35 = vsel %vm496_vm3, %v487_v28, %v489_v34  ;;  %v498_v36 = vsel %vm496_vm3, %v489_v34, %v491_v33 }
  0x96   : > { %v505_v37 = vsel %vm240_vm0, %v497_v35, 0  ;;  %721 = vmatmul.mubr.msk.bf16.vlgmr.msra.gmra.mrb[0].mxu1 %vm236_vm1, %v712_v29  ;;  %723 = vmatprep.subr.msk.bf16.mxu0 %vm240_vm0, %v498_v36 }
  0x97   : > { %517 = vmatpush1.bf16.msra.mxu0 %v505_v37  ;;  %v495_v38 = vpop.permute.xlu1 %494  ;;  %589 = vmatprep.mubr.bf16.mxu1 %v812_v0 }
  0x98   : > { %v493_v39 = vpop.permute.xlu0 %492 }
  0x99   : > { %v499_v40 = vsel %vm496_vm3, %v491_v33, %v493_v39  ;;  %v500_v41 = vsel %vm496_vm3, %v493_v39, %v495_v38 }
  0x9a   : > { %v511_v42 = vsel %vm240_vm0, %v499_v40, 0  ;;  %725 = vmatprep.subr.msk.bf16.mxu1 %vm240_vm0, %v500_v41 }
  0x9b   : > { %558 = vmatpush1.bf16.msra.mxu1 %v511_v42 }
  0x9e   : > { %724 = vmatmul.mubr.msk.bf16.vlgmr.msra.gmra.mrb[0].mxu0 %vm236_vm1, %v722_v43 }
  0xa2   : > { %726 = vmatmul.mubr.msk.bf16.vlgmr.msra.gmra.mrb[0].mxu1 %vm236_vm1, %v722_v43 }
  0xa9   : > { %v213_v44 = vpop.permute.xlu0 %212 }
 0x171   : > { %v550_v45 = vpop.f32.mrb[0].mxu0 }
 0x172   : > { %v730_v46 = vadd.f32 %v550_v45, %v213_v44  ;;  %v552_v47 = vpop.f32.mrb[1].mxu0 }
 0x173   : > { %v731_v48 = vadd.f32 %v552_v47, %v213_v44  ;;  %v554_v49 = vpop.f32.mrb[2].mxu0 }
 0x174   : > { %602 = vst [vmem:[%s206_s6] sm:$0xff] %v730_v46  ;;  %v555_v50 = vpop.f32.mrb[3].mxu0 }
 0x175   : > { %603 = vst [vmem:[%s206_s6 + $0x8] sm:$0xff] %v731_v48  ;;  %v591_v51 = vpop.f32.mrb[0].mxu1 }
 0x176   : > { %v732_v52 = vadd.f32 %v591_v51, %v213_v44  ;;  %v593_v53 = vpop.f32.mrb[1].mxu1 }
 0x177   : > { %v733_v54 = vadd.f32 %v593_v53, %v213_v44  ;;  %v595_v55 = vpop.f32.mrb[2].mxu1 }
 0x178   : > { %604 = vst [vmem:[%s206_s6 + $0x10] sm:$0xff] %v732_v52  ;;  %v596_v56 = vpop.f32.mrb[3].mxu1 }
 0x179   : > { %605 = vst [vmem:[%s206_s6 + $0x18] sm:$0xff] %v733_v54 }
 0x17a PF: > { %s13_s14 = sadd.s32 1, %s810_s14   ;;  %s913_s12 = smov %s806_s13 }
 0x17b   : > { %p10_p5 = scmp.ge.s32.totalorder %s13_s14, 4   ;;  %s914_s13 = smov %s916_s15 }
 0x17d   :  { %12 = sbr.rel (!%p10_p5) target bundleno = 2 (0x2), region = 64 }

</bundles_post_ra>
